<compile_context>
chip_gen: v7x
topology: tpu7x:2x2x1
jax: 0.10.0
libtpu: 0.0.40
codegen_flags: <defaults>
</compile_context>

<pallas_src>
import functools

import jax
import jax.numpy as jnp
from jax import lax
from jax.experimental import pallas as pl
from jax.experimental.pallas import tpu as pltpu


_MIB = 1 << 20
_VMEM_TARGET = 40 * _MIB      # shrink the main tile above this working-set estimate
_VMEM_SET_AT = 14 * _MIB      # set vmem_limit_bytes above ~v5e's 16 MiB default scope
_VMEM_CAP = 60 * _MIB         # stay below v7x's 64 MiB physical per-TensorCore VMEM


def _round_up(x, m):
    return (x + m - 1) // m * m


def _softplus(x):
    # numerically stable softplus; exp / log1p go to the EUP slot (free vs VPU)
    return jnp.maximum(x, 0.0) + jnp.log1p(jnp.exp(-jnp.abs(x)))


def _compiler_params(est_bytes, dims):
    vmem = None
    if est_bytes > _VMEM_SET_AT:
        vmem = int(min(est_bytes * 1.4 + 2 * _MIB, _VMEM_CAP))
    return pltpu.CompilerParams(dimension_semantics=dims, vmem_limit_bytes=vmem)


def _main_vmem_bytes(tbi, tbj, D, dt_bytes):
    lane_w = 128 if tbj % 128 == 0 else tbj
    fn_tiles = 2 * (tbi + tbj) * D * dt_bytes          # double-buffered fn row/col tiles
    small_in = 2 * (tbj + 2 * tbi) * 4                 # lab_col strip + lab_row + pos
    temps = 4 * tbi * tbj * 4                          # sim / losses / valid / masked (f32)
    scratch = 2 * tbi * lane_w * 4                     # lane-wise accumulators
    outs = 2 * 2 * tbi * 4
    return fn_tiles + small_in + temps + scratch + outs


def _prologue_vmem_bytes(tp, D, dt_bytes):
    # features f32 + gathered centers f32 (double-buffered) + fn output
    return 2 * tp * D * (8 + dt_bytes) + 8 * tp * 4


# ---------------------------------------------------------------------------
# Prologue: per-row L2 normalization + positive distances, computed once.
# fn is emitted in the matmul dtype (bf16 by default) to feed the MXU.
# ---------------------------------------------------------------------------
def _prologue_kernel(feat_ref, cent_ref, lab_ref, fn_ref, pos_ref):
    f = feat_ref[...].astype(jnp.float32)                        # (tp, D)
    bc = cent_ref[...].astype(jnp.float32)                       # (tp, D)
    # F.normalize: x / max(||x||, 1e-12)  ==  x * rsqrt(max(||x||^2, 1e-24))
    inv = lax.rsqrt(jnp.maximum(jnp.sum(f * f, axis=1, keepdims=True), 1e-24))
    fn = f * inv
    pos = 1.0 - jnp.sum(fn * bc, axis=1, keepdims=True)          # (tp, 1) f32
    # Poison padded rows (label == -1) so they fall out of the (losses > 0)
    # test downstream: softplus(-1e30) == 0 exactly, hard margin stays < 0.
    pos_ref[...] = jnp.where(lab_ref[...] < 0, jnp.float32(-1e30), pos)
    fn_ref[...] = fn.astype(fn_ref.dtype)


# ---------------------------------------------------------------------------
# Main tiled kernel over the (B, B) pair matrix.
# grid = (ni, nj); lane-wise partial sums accumulated in VMEM scratch across j,
# cross-lane reduction + (tb, 1) store deferred to the last j step.
# ---------------------------------------------------------------------------
def _push_tile_kernel(fn_row_ref, fn_col_ref, pos_ref, lab_row_ref, lab_col_ref,
                      row_sum_ref, row_cnt_ref, sum_acc_ref, cnt_acc_ref,
                      *, margin, soft_margin):
    j = pl.program_id(1)
    nj = pl.num_programs(1)
    tbj = fn_col_ref.shape[0]
    lane_w = sum_acc_ref.shape[1]

    @pl.when(j == 0)
    def _():
        sum_acc_ref[...] = jnp.zeros_like(sum_acc_ref)
        cnt_acc_ref[...] = jnp.zeros_like(cnt_acc_ref)

    # neg = 1 - fn_i @ fn_j^T; contraction on dim 1 of both operands feeds the
    # MXU with a transposed RHS directly (no materialized relayout).
    sim = lax.dot_general(fn_row_ref[...], fn_col_ref[...],
                          dimension_numbers=(((1,), (1,)), ((), ())),
                          preferred_element_type=jnp.float32)     # (tbi, tbj)
    diff = pos_ref[...] + (sim - 1.0)                             # pos - neg
    losses = _softplus(diff) if soft_margin else margin + diff

    li = lab_row_ref[...]                                         # (tbi, 1) int32
    lj = lab_col_ref[...]                                         # (1, tbj) int32
    # padded rows are already excluded via the poisoned pos (losses <= 0);
    # padded columns are excluded by (lj >= 0).
    valid = ((li != lj) & (lj >= 0) & (losses > 0.0)).astype(jnp.float32)
    masked = losses * valid

    # Lane-wise accumulation (pure VPU adds over 128-aligned static chunks);
    # the XLU cross-lane reduce is deferred to the last j step so it never
    # competes with the MXU inside the j loop.
    m = masked[:, 0:lane_w]
    v = valid[:, 0:lane_w]
    for c in range(1, tbj // lane_w):
        sl = slice(c * lane_w, (c + 1) * lane_w)
        m = m + masked[:, sl]
        v = v + valid[:, sl]
    sum_acc_ref[...] += m
    cnt_acc_ref[...] += v

    @pl.when(j == nj - 1)
    def _():
        row_sum_ref[...] = jnp.sum(sum_acc_ref[...], axis=1, keepdims=True)
        row_cnt_ref[...] = jnp.sum(cnt_acc_ref[...], axis=1, keepdims=True)


def push_plus_loss(features, centers, labels, *, margin=0.7, soft_margin=False,
                   matmul_dtype=jnp.bfloat16, tile=512):
    """JAX/Pallas equivalent of PushPlusLoss.forward(features, centers, labels).

    matmul_dtype: MXU operand dtype for fn @ fn.T (bf16 is 2-3x faster on
    v6e/v7x at ~1e-3 relative error on the cosine distances; pass jnp.float32
    for exact f32 numerics).  All elementwise math stays in f32.
    """
    B, D = features.shape
    features = features.astype(jnp.float32)
    labels = labels.astype(jnp.int32)
    # TODO(synk): the centers[labels] row gather stays in XLA glue; fusing it
    # into the prologue (one-hot matmul / dynamic gather on a VMEM-resident
    # centers table) would save ~2*B*D*4 bytes of HBM traffic when C*D fits.
    batch_centers = centers.astype(jnp.float32)[labels, :]        # (B, D)

    dt_bytes = jnp.dtype(matmul_dtype).itemsize
    align = 16 if dt_bytes < 4 else 8        # bf16 packs 16 rows per vreg sublane group

    # ---- tile selection ----------------------------------------------------
    if B <= tile:
        b_pad = _round_up(max(B, align), align)
        tbj = b_pad
        # v7x: give the "parallel" i axis >= 2 blocks when per-tile compute is
        # big enough to amortize the extra grid step (uses the second TC).
        if b_pad >= 256 and (b_pad >= 512 or D >= 2048):
            b_pad = _round_up(b_pad, 2 * align)
            tbi, tbj = b_pad // 2, b_pad
        else:
            tbi = b_pad
    else:
        assert tile % 128 == 0, "tile must be a multiple of 128"
        tb = tile
        while tb > 128 and _main_vmem_bytes(tb, tb, D, dt_bytes) > _VMEM_TARGET:
            tb //= 2
        tbi = tbj = tb
        b_pad = _round_up(B, tb)

    pad = b_pad - B
    if pad:
        features = jnp.pad(features, ((0, pad), (0, 0)))
        batch_centers = jnp.pad(batch_centers, ((0, pad), (0, 0)))
        labels = jnp.pad(labels, (0, pad), constant_values=-1)     # -1 => excluded

    lab_row = labels.reshape(b_pad, 1)
    lab_col = labels.reshape(1, b_pad)

    # ---- prologue: normalize + pos (+ pad poisoning), computed once --------
    tp = 256 if (b_pad > 256 and b_pad % 256 == 0) else b_pad
    fn, pos = pl.pallas_call(
        _prologue_kernel,
        out_shape=(jax.ShapeDtypeStruct((b_pad, D), matmul_dtype),
                   jax.ShapeDtypeStruct((b_pad, 1), jnp.float32)),
        grid=(b_pad // tp,),
        in_specs=[pl.BlockSpec((tp, D), lambda i: (i, 0)),
                  pl.BlockSpec((tp, D), lambda i: (i, 0)),
                  pl.BlockSpec((tp, 1), lambda i: (i, 0))],
        out_specs=(pl.BlockSpec((tp, D), lambda i: (i, 0)),
                   pl.BlockSpec((tp, 1), lambda i: (i, 0))),
        compiler_params=_compiler_params(
            _prologue_vmem_bytes(tp, D, dt_bytes), ("parallel",)),
    )(features, batch_centers, lab_row)

    # ---- main tiled pair-loss kernel ----------------------------------------
    lane_w = 128 if tbj % 128 == 0 else tbj
    kernel = functools.partial(_push_tile_kernel,
                               margin=float(margin),
                               soft_margin=bool(soft_margin))
    row_sum, row_cnt = pl.pallas_call(
        kernel,
        out_shape=(jax.ShapeDtypeStruct((b_pad, 1), jnp.float32),
                   jax.ShapeDtypeStruct((b_pad, 1), jnp.float32)),
        grid=(b_pad // tbi, b_pad // tbj),                 # reduction axis (j) last
        in_specs=[
            pl.BlockSpec((tbi, D), lambda i, j: (i, 0)),   # fn row tile
            pl.BlockSpec((tbj, D), lambda i, j: (j, 0)),   # fn col tile
            pl.BlockSpec((tbi, 1), lambda i, j: (i, 0)),   # pos distances (poisoned pads)
            pl.BlockSpec((tbi, 1), lambda i, j: (i, 0)),   # labels (rows)
            pl.BlockSpec((1, tbj), lambda i, j: (0, j)),   # labels (cols)
        ],
        out_specs=(pl.BlockSpec((tbi, 1), lambda i, j: (i, 0)),
                   pl.BlockSpec((tbi, 1), lambda i, j: (i, 0))),
        scratch_shapes=[pltpu.VMEM((tbi, lane_w), jnp.float32),
                        pltpu.VMEM((tbi, lane_w), jnp.float32)],
        compiler_params=_compiler_params(
            _main_vmem_bytes(tbi, tbj, D, dt_bytes), ("parallel", "arbitrary")),
    )(fn, fn, pos, lab_row, lab_col)

    # ---- tiny final reduction (glue) ----------------------------------------
    total = jnp.sum(row_sum)
    # per-row counts are exact in f32 (<= B < 2^24); sum the total in int32 so
    # very large batches don't lose integer exactness.
    n_valid = jnp.sum(row_cnt.astype(jnp.int32))
    # original returns 0 when no valid pair exists
    return jnp.where(n_valid > 0,
                     total / jnp.maximum(n_valid.astype(jnp.float32), 1.0),
                     jnp.zeros((), jnp.float32))


def _reference(features, centers, labels, margin=0.7, soft_margin=False,
               matmul_dtype=jnp.float32):
    # pure-JAX reference mirroring the PyTorch forward (matmul_dtype mirrors the
    # kernel's MXU-operand numerics when set to bf16).
    f = features.astype(jnp.float32)
    inv = lax.rsqrt(jnp.maximum(jnp.sum(f * f, axis=1, keepdims=True), 1e-24))
    fn = f * inv
    bc = centers.astype(jnp.float32)[labels, :]
    pos = 1.0 - jnp.sum(fn * bc, axis=1, keepdims=True)
    fnm = fn.astype(matmul_dtype)
    neg = 1.0 - jnp.dot(fnm, fnm.T,
                        preferred_element_type=jnp.float32).astype(jnp.float32)
    if soft_margin:
        losses = jax.nn.softplus(pos - neg)
    else:
        losses = margin + pos - neg
    pair = labels[:, None] != labels[None, :]
    valid = (pair & (losses > 0.0)).astype(jnp.float32)
    nv = jnp.sum(valid)
    return jnp.where(nv > 0, jnp.sum(losses * valid) / jnp.maximum(nv, 1.0), 0.0)


if __name__ == "__main__":
    key = jax.random.PRNGKey(0)
    k_f, k_c, k_l, k_f2, k_l2, k_f3, k_l3 = jax.random.split(key, 7)

    D, C = 32, 4
    centers = jax.random.normal(k_c, (C, D), dtype=jnp.float32)
    centers = centers / jnp.linalg.norm(centers, axis=1, keepdims=True)

    # 1) exact f32-MXU path, single-tile batch
    B = 8
    features = jax.random.normal(k_f, (B, D), dtype=jnp.float32)
    labels = jax.random.randint(k_l, (B,), 0, C, dtype=jnp.int32)
    out = jax.block_until_ready(
        push_plus_loss(features, centers, labels, margin=0.7,
                       soft_margin=False, matmul_dtype=jnp.float32))
    ref = _reference(features, centers, labels, margin=0.7, soft_margin=False,
                     matmul_dtype=jnp.float32)
    assert jnp.allclose(out, ref, atol=1e-4, rtol=1e-4), (out, ref)

    # 2) default bf16-MXU path, ragged batch (exercises padding / poisoned pos)
    B2 = 10
    features2 = jax.random.normal(k_f2, (B2, D), dtype=jnp.float32)
    labels2 = jax.random.randint(k_l2, (B2,), 0, C, dtype=jnp.int32)
    out2 = jax.block_until_ready(
        push_plus_loss(features2, centers, labels2, margin=0.7, soft_margin=False))
    ref2 = _reference(features2, centers, labels2, margin=0.7, soft_margin=False,
                      matmul_dtype=jnp.bfloat16)
    assert jnp.allclose(out2, ref2, atol=1e-3, rtol=1e-3), (out2, ref2)

    # 3) soft-margin variant
    out3 = jax.block_until_ready(
        push_plus_loss(features2, centers, labels2, soft_margin=True))
    ref3 = _reference(features2, centers, labels2, soft_margin=True,
                      matmul_dtype=jnp.bfloat16)
    assert jnp.allclose(out3, ref3, atol=1e-3, rtol=1e-3), (out3, ref3)

    # 4) multi-tile path: B > 512 exercises the (ni, nj) grid, the lane-wise
    #    scratch accumulators, the deferred cross-lane reduction, and padding.
    B3 = 640
    features3 = jax.random.normal(k_f3, (B3, D), dtype=jnp.float32)
    labels3 = jax.random.randint(k_l3, (B3,), 0, C, dtype=jnp.int32)
    out4 = jax.block_until_ready(
        push_plus_loss(features3, centers, labels3, margin=0.7, soft_margin=False))
    ref4 = _reference(features3, centers, labels3, margin=0.7, soft_margin=False,
                      matmul_dtype=jnp.bfloat16)
    assert jnp.allclose(out4, ref4, atol=1e-3, rtol=1e-3), (out4, ref4)

    print("KERNEL_OK")
</pallas_src>

<mosaic_0001>
module attributes {stable_mosaic.version = 11 : i64} {
  func.func @_prologue_kernel(%arg0: i32, %arg1: memref<8x32xf32, #tpu.memory_space<vmem>>, %arg2: memref<8x32xf32, #tpu.memory_space<vmem>>, %arg3: memref<8x1xi32, #tpu.memory_space<vmem>>, %arg4: memref<8x32xf32, #tpu.memory_space<vmem>>, %arg5: memref<8x1xf32, #tpu.memory_space<vmem>>) attributes {dimension_semantics = [#tpu.dimension_semantics<parallel>], iteration_bounds = array<i64: 1>, scalar_prefetch = 0 : i64, scratch_operands = 0 : i64, tpu.core_type = #tpu.core_type<tc>, window_params = [{transform_indices = @transform_0, window_bounds = array<i64: 8, 32>}, {transform_indices = @transform_1, window_bounds = array<i64: 8, 32>}, {transform_indices = @transform_2, window_bounds = array<i64: 8, 1>}, {transform_indices = @transform_3, window_bounds = array<i64: 8, 32>}, {transform_indices = @transform_4, window_bounds = array<i64: 8, 1>}]} {
    %c0 = arith.constant 0 : index
    %c0_0 = arith.constant 0 : index
    %0 = vector.load %arg1[%c0, %c0_0] : memref<8x32xf32, #tpu.memory_space<vmem>>, vector<8x32xf32>
    %c0_1 = arith.constant 0 : index
    %c0_2 = arith.constant 0 : index
    %1 = vector.load %arg2[%c0_1, %c0_2] : memref<8x32xf32, #tpu.memory_space<vmem>>, vector<8x32xf32>
    %2 = arith.mulf %0, %0 : vector<8x32xf32>
    %cst = arith.constant dense<0.000000e+00> : vector<8xf32>
    %3 = vector.multi_reduction <add>, %2, %cst [1] : vector<8x32xf32> to vector<8xf32>
    %4 = vector.shape_cast %3 : vector<8xf32> to vector<8x1xf32>
    %cst_3 = arith.constant 1.000000e-24 : f32
    %5 = vector.broadcast %cst_3 : f32 to vector<8x1xf32>
    %6 = arith.maximumf %4, %5 : vector<8x1xf32>
    %7 = math.rsqrt %6 : vector<8x1xf32>
    %8 = vector.broadcast %7 : vector<8x1xf32> to vector<8x32xf32>
    %9 = arith.mulf %0, %8 : vector<8x32xf32>
    %10 = arith.mulf %9, %1 : vector<8x32xf32>
    %cst_4 = arith.constant dense<0.000000e+00> : vector<8xf32>
    %11 = vector.multi_reduction <add>, %10, %cst_4 [1] : vector<8x32xf32> to vector<8xf32>
    %12 = vector.shape_cast %11 : vector<8xf32> to vector<8x1xf32>
    %cst_5 = arith.constant 1.000000e+00 : f32
    %13 = vector.broadcast %cst_5 : f32 to vector<8x1xf32>
    %14 = arith.subf %13, %12 : vector<8x1xf32>
    %c0_6 = arith.constant 0 : index
    %c0_7 = arith.constant 0 : index
    %15 = vector.load %arg3[%c0_6, %c0_7] : memref<8x1xi32, #tpu.memory_space<vmem>>, vector<8x1xi32>
    %c0_i32 = arith.constant 0 : i32
    %16 = vector.broadcast %c0_i32 : i32 to vector<8x1xi32>
    %17 = arith.cmpi slt, %15, %16 : vector<8x1xi32>
    %cst_8 = arith.constant -1.000000e+30 : f32
    %18 = vector.broadcast %cst_8 : f32 to vector<8x1xf32>
    %19 = arith.select %17, %18, %14 : vector<8x1xi1>, vector<8x1xf32>
    %c0_9 = arith.constant 0 : index
    %c0_10 = arith.constant 0 : index
    %20 = vector.load %arg5[%c0_9, %c0_10] : memref<8x1xf32, #tpu.memory_space<vmem>>, vector<8x1xf32>
    tpu.vector_store %arg5[%c0_9, %c0_10], %19 {strides = array<i32>} : memref<8x1xf32, #tpu.memory_space<vmem>>, vector<8x1xf32>,
    %c0_11 = arith.constant 0 : index
    %c0_12 = arith.constant 0 : index
    %21 = vector.load %arg4[%c0_11, %c0_12] : memref<8x32xf32, #tpu.memory_space<vmem>>, vector<8x32xf32>
    tpu.vector_store %arg4[%c0_11, %c0_12], %9 {strides = array<i32>} : memref<8x32xf32, #tpu.memory_space<vmem>>, vector<8x32xf32>,
    return
  }
  func.func @transform_0(%arg0: i32) -> (i32, i32) {
    %c0_i32 = arith.constant 0 : i32
    %c0_i32_0 = arith.constant 0 : i32
    return %arg0, %c0_i32 : i32, i32
  }
  func.func @transform_1(%arg0: i32) -> (i32, i32) {
    %c0_i32 = arith.constant 0 : i32
    %c0_i32_0 = arith.constant 0 : i32
    return %arg0, %c0_i32 : i32, i32
  }
  func.func @transform_2(%arg0: i32) -> (i32, i32) {
    %c0_i32 = arith.constant 0 : i32
    %c0_i32_0 = arith.constant 0 : i32
    return %arg0, %c0_i32 : i32, i32
  }
  func.func @transform_3(%arg0: i32) -> (i32, i32) {
    %c0_i32 = arith.constant 0 : i32
    %c0_i32_0 = arith.constant 0 : i32
    return %arg0, %c0_i32 : i32, i32
  }
  func.func @transform_4(%arg0: i32) -> (i32, i32) {
    %c0_i32 = arith.constant 0 : i32
    %c0_i32_0 = arith.constant 0 : i32
    return %arg0, %c0_i32 : i32, i32
  }
}

</mosaic_0001>

<bundles_post_ra>
// kernel: tpu_custom_call.1
= control target key start
LH: loop header
LB: loop body
LE: loop exit
PB: predicated region body
PF: predicated region fallthrough
CT: control target
= control target key end

     0   :  { %10 = vsyncpa [#allocation3], 0  ;;  %s181_s0 = inlined_call_operand.vmem [shape: f32[8,32], index: 0, kind: input, shape index: {}]   ;;  %s182_s1 = inlined_call_operand.hbm [shape: f32[8,32], index: 1, kind: input, shape index: {}]   ;;  %s183_s2 = inlined_call_operand.vmem [shape: s32[8,1], index: 2, kind: input, shape index: {}]   ;;  %s184_s3 = inlined_call_operand.hbm [shape: f32[8,32], index: 3, kind: output, shape index: {0}]   ;;  %s185_s4 = inlined_call_operand.vmem [shape: f32[8,1], index: 4, kind: output, shape index: {1}]  }
   0x1   :  { %11 = vsyncpa [#allocation4], 0  ;;  %s121_s15 = smov [#allocation2]   ;;  %s73_s19 = scalar_lea.hbm %s182_s1, 128 }
   0x2   :  { %s20_s16 = sshll.u32 %s121_s15, 4  ;;  %p74_p0 = scmp.ne.s32.totalorder %s182_s1, %s73_s19  ;;  %s21_s16 = int_to_ptr.vmem [resolvable:$true] %s20_s16 }
   0x3   :  { %p77_p1 = scmp.lt.u32.totalorder %s73_s19, %s182_s1 }
   0x5   :  { %p79_p2 = pnand %p77_p1, %p74_p0 }
   0x7   :  { %82 = shalt.err (!%p79_p2)
}
   0x8   :  { %s83_s24 = scalar_lea.vmem %s21_s16, 128  ;;  %p88_p4 = scmp.lt.s32.totalorder %s21_s16, %s21_s16 }
   0x9   :  { %p84_p3 = scmp.ne.s32.totalorder %s21_s16, %s83_s24  ;;  %p89_p5 = scmp.lt.s32.totalorder %s83_s24, %s83_s24 }
   0xb   :  { %p90_p6 = por %p89_p5, %p88_p4 }
   0xd   :  { %p91_p7 = pnand %p90_p6, %p84_p3 }
   0xf   :  { %94 = shalt.err (!%p91_p7)
}
  0x10   :  { %23 = dma.hbm_to_vmem [thread:$0]  %s182_s1, 128, %s21_s16, [#allocation3]  }
  0x11   :  { %117 = dma.done.wait [#allocation3], 128  }
  0x12   :  { %118 = vsyncadd [#allocation3], 4294967168  ;;  %v29_v0 = vld [vmem:[%s181_s0] sm:$0xff]  ;;  %vm32_vm0 = vcmask 261120   ;;  %s122_s1 = smov [#allocation5]  }
  0x13   :  { %v31_v1 = vmul.f32 %v29_v0, %v29_v0  ;;  %v30_v6 = vld [vmem:[#allocation2] sm:$0xff]  ;;  %s56_s29 = sshll.u32 %s122_s1, 4  ;;  %s57_s29 = int_to_ptr.vmem [resolvable:$true] %s56_s29 }
  0x14   :  { %s95_s30 = scalar_lea.vmem %s57_s29, 128  ;;  %p100_p9 = scmp.lt.s32.totalorder %s57_s29, %s57_s29 }
  0x15   :  { %v33_v2 = vsel %vm32_vm0, %v31_v1, 0.0  ;;  %p96_p8 = scmp.ne.s32.totalorder %s57_s29, %s95_s30  ;;  %p101_p10 = scmp.lt.s32.totalorder %s95_s30, %s95_s30 }
  0x16   :  { %34 = vadd.xlane.f32.xlu0 %v33_v2 }
  0x17   :  { %p102_p11 = por %p101_p10, %p100_p9 }
  0x19   :  { %p103_p12 = pnand %p102_p11, %p96_p8 }
  0xa3   :  { %v35_v3 = vpop.xlane.xlu0 %34 }
  0xa4   :  { %v36_v4 = vmax.f32 %v35_v3, 1e-24 }
  0xa6   :  { %71 = vrsqrt.f32 %v36_v4 }
  0xb0   :  { %v72_v5 = vpop.eup %71 }
  0xb1   :  { %v38_v7 = vmul.f32 %v72_v5, %v29_v0 }
  0xb3   :  { %v39_v8 = vmul.f32 %v38_v7, %v30_v6  ;;  %49 = vst.msk [vmem:[#allocation5] sm:$0xff] %vm32_vm0, %v38_v7 }
  0xb5   :  { %v40_v9 = vsel %vm32_vm0, %v39_v8, 0.0 }
  0xb6   :  { %41 = vadd.xlane.f32.xlu0 %v40_v9 }
  0xb7   :  { %106 = shalt.err (!%p103_p12)
}
  0xb8   :  { %s107_s6 = scalar_lea.hbm %s184_s3, 128 }
  0xb9   :  { %p108_p13 = scmp.ne.s32.totalorder %s184_s3, %s107_s6  ;;  %p111_p0 = scmp.lt.u32.totalorder %s107_s6, %s184_s3 }
  0xbb   :  { %p113_p1 = pnand %p111_p0, %p108_p13 }
  0xbd   :  { %116 = shalt.err (!%p113_p1)
}
  0xbe   :  { %59 = dma.vmem_to_hbm [thread:$0]  %s57_s29, 128, %s184_s3, [#allocation4]   ;;  %v44_v10 = vld [vmem:[%s183_s2] sm:$0xff]  ;;  %vm47_vm2 = vcmask 7168  }
  0xbf   :  { %vm45_vm1 = vcmp.lt.s32.totalorder %v44_v10, 0 }
 0x143   :  { %v42_v11 = vpop.xlane.xlu0 %41 }
 0x144   :  { %v43_v12 = vsub.f32 1.0, %v42_v11 }
 0x146   :  { %v46_v13 = vsel %vm45_vm1, -1e+30, %v43_v12 }
 0x147   :  { %48 = vst.msk [vmem:[%s185_s4] sm:$0xff] %vm47_vm2, %v46_v13 }
 0x148   :  { %119 = dma.done.wait [#allocation4], 128  }
 0x149   :  { %120 = vsyncadd [#allocation4], 4294967168 }
 0x14a   :  { %67 = vsyncpa [#allocation3], 1 }
 0x14b   :  { %68 = vsyncpa [#allocation4], 1 }

</bundles_post_ra>
